<compile_context>
chip_gen: v7x
topology: tpu7x:2x2x1
jax: 0.10.0
libtpu: 0.0.40
codegen_flags: <defaults>
</compile_context>

<pallas_src>
import functools

import jax
import jax.numpy as jnp
from jax.experimental import pallas as pl
from jax.experimental.pallas import tpu as pltpu

EPS = 1e-5


def _pick_tile(total, base, cap):
    """Largest multiple of `base` that divides `total`, capped at `cap`.
    Falls back to the full extent when `total` is not a multiple of `base`
    (a full-extent block is always legal for the (8, 128) constraint)."""
    if total % base != 0:
        return total
    best = base
    m = base
    while m <= min(cap, total):
        if total % m == 0:
            best = m
        m += base
    return best


def _stats_kernel(x_ref, sum_ref, sq_ref, acc_s, acc_q):
    """Accumulate per-channel sum and sum(x^2) over N and the HW grid axis."""
    j = pl.program_id(1)

    @pl.when(j == 0)
    def _():
        acc_s[...] = jnp.zeros_like(acc_s)
        acc_q[...] = jnp.zeros_like(acc_q)

    x = x_ref[...].astype(jnp.float32)          # (N, c_tile, hw_tile)
    acc_s[...] += jnp.sum(x, axis=0)            # elementwise adds (VPU)
    acc_q[...] += jnp.sum(x * x, axis=0)

    @pl.when(j == pl.num_programs(1) - 1)
    def _():
        # Single cross-lane (XLU) reduction per channel tile.
        sum_ref[...] = jnp.sum(acc_s[...], axis=1, keepdims=True)
        sq_ref[...] = jnp.sum(acc_q[...], axis=1, keepdims=True)


def _apply_kernel(x_ref, scale_ref, bias_ref, o_ref):
    x = x_ref[...].astype(jnp.float32)          # (N, c_tile, hw_tile)
    s = scale_ref[...][None, :, :]              # (1, c_tile, 1)
    b = bias_ref[...][None, :, :]
    o_ref[...] = (x * s + b).astype(o_ref.dtype)


@functools.partial(jax.jit, static_argnames=("eps",))
def batchnorm2d(x_nchw, gamma, beta, eps=EPS):
    N, C, H, W = x_nchw.shape
    HW = H * W
    x_r = x_nchw.reshape(N, C, HW)              # trailing-dim reshape: free

    # Tile sizes (respect the (8, 128) constraint on the last two block dims).
    c_tile = _pick_tile(C, 8, 64)
    budget_elems = (2 * 1024 * 1024) // 4       # ~2 MiB f32 per x block
    hw_cap = max(128, (budget_elems // max(1, N * c_tile)) // 128 * 128)
    hw_tile = _pick_tile(HW, 128, hw_cap)

    grid = (C // c_tile, HW // hw_tile)

    # ---- pass 1: per-channel sum and sum of squares -------------------------
    sum_c, sq_c = pl.pallas_call(
        _stats_kernel,
        out_shape=(
            jax.ShapeDtypeStruct((C, 1), jnp.float32),
            jax.ShapeDtypeStruct((C, 1), jnp.float32),
        ),
        grid=grid,
        in_specs=[pl.BlockSpec((N, c_tile, hw_tile), lambda i, j: (0, i, j))],
        out_specs=[
            pl.BlockSpec((c_tile, 1), lambda i, j: (i, 0)),
            pl.BlockSpec((c_tile, 1), lambda i, j: (i, 0)),
        ],
        scratch_shapes=[
            pltpu.VMEM((c_tile, hw_tile), jnp.float32),
            pltpu.VMEM((c_tile, hw_tile), jnp.float32),
        ],
        compiler_params=pltpu.CompilerParams(
            dimension_semantics=("parallel", "arbitrary"),
            vmem_limit_bytes=32 * 1024 * 1024,
        ),
    )(x_r)

    # ---- tiny per-channel finalize (C elements; negligible, stays in XLA) ---
    count = jnp.float32(N * HW)
    mean = sum_c[:, 0] / count
    # Biased variance (what BatchNorm uses for normalization); f32 accumulation
    # keeps the E[x^2] - mean^2 form within tolerance.
    var = sq_c[:, 0] / count - mean * mean
    inv_std = jax.lax.rsqrt(var + jnp.float32(eps))
    scale = gamma.astype(jnp.float32) * inv_std
    bias = beta.astype(jnp.float32) - mean * scale
    scale2 = scale.reshape(C, 1)
    bias2 = bias.reshape(C, 1)

    # ---- pass 2: y = x * scale + bias ---------------------------------------
    out_r = pl.pallas_call(
        _apply_kernel,
        out_shape=jax.ShapeDtypeStruct((N, C, HW), x_nchw.dtype),
        grid=grid,
        in_specs=[
            pl.BlockSpec((N, c_tile, hw_tile), lambda i, j: (0, i, j)),
            pl.BlockSpec((c_tile, 1), lambda i, j: (i, 0)),   # fetched once per c-tile
            pl.BlockSpec((c_tile, 1), lambda i, j: (i, 0)),
        ],
        out_specs=pl.BlockSpec((N, c_tile, hw_tile), lambda i, j: (0, i, j)),
        compiler_params=pltpu.CompilerParams(
            dimension_semantics=("parallel", "parallel"),
            vmem_limit_bytes=32 * 1024 * 1024,
        ),
    )(x_r, scale2, bias2)

    return out_r.reshape(N, C, H, W)


if __name__ == "__main__":
    key = jax.random.PRNGKey(0)
    N, C, H, W = 2, 4, 16, 16
    x = jax.random.normal(key, (N, C, H, W), dtype=jnp.float32)

    # nn.BatchNorm2d(in_channels) default init: weight (gamma)=1, bias (beta)=0
    gamma = jnp.ones((C,), dtype=jnp.float32)
    beta = jnp.zeros((C,), dtype=jnp.float32)

    out = batchnorm2d(x, gamma, beta)
    out = jax.block_until_ready(out)

    # Reference: BatchNorm2d training-mode forward (batch stats, biased var).
    mean = jnp.mean(x, axis=(0, 2, 3), keepdims=True)
    var = jnp.mean((x - mean) ** 2, axis=(0, 2, 3), keepdims=True)
    ref = (x - mean) / jnp.sqrt(var + EPS)
    assert jnp.allclose(out, ref, atol=1e-4, rtol=1e-4), "mismatch vs reference"

    print("KERNEL_OK")
</pallas_src>

<mosaic_0001>
module attributes {stable_mosaic.version = 11 : i64} {
  func.func @_stats_kernel(%arg0: i32, %arg1: i32, %arg2: memref<2x4x256xf32, #tpu.memory_space<vmem>>, %arg3: memref<4x1xf32, #tpu.memory_space<vmem>>, %arg4: memref<4x1xf32, #tpu.memory_space<vmem>>, %arg5: memref<4x256xf32, #tpu.memory_space<vmem>>, %arg6: memref<4x256xf32, #tpu.memory_space<vmem>>) attributes {dimension_semantics = [#tpu.dimension_semantics<parallel>, #tpu.dimension_semantics<arbitrary>], iteration_bounds = array<i64: 1, 1>, scalar_prefetch = 0 : i64, scratch_operands = 2 : i64, tpu.core_type = #tpu.core_type<tc>, window_params = [{transform_indices = @transform_0, window_bounds = array<i64: 2, 4, 256>}, {transform_indices = @transform_1, window_bounds = array<i64: 4, 1>}, {transform_indices = @transform_2, window_bounds = array<i64: 4, 1>}]} {
    %c0_i32 = arith.constant 0 : i32
    %0 = arith.cmpi eq, %arg1, %c0_i32 : i32
    %1 = arith.extui %0 : i1 to i32
    %c0_i32_0 = arith.constant 0 : i32
    %2 = arith.cmpi ne, %1, %c0_i32_0 : i32
    scf.if %2 {
      %cst_14 = arith.constant 0.000000e+00 : f32
      %16 = vector.broadcast %cst_14 : f32 to vector<4x256xf32>
      %c0_15 = arith.constant 0 : index
      %c0_16 = arith.constant 0 : index
      %17 = vector.load %arg5[%c0_15, %c0_16] : memref<4x256xf32, #tpu.memory_space<vmem>>, vector<4x256xf32>
      tpu.vector_store %arg5[%c0_15, %c0_16], %16 {strides = array<i32>} : memref<4x256xf32, #tpu.memory_space<vmem>>, vector<4x256xf32>,
      %cst_17 = arith.constant 0.000000e+00 : f32
      %18 = vector.broadcast %cst_17 : f32 to vector<4x256xf32>
      %c0_18 = arith.constant 0 : index
      %c0_19 = arith.constant 0 : index
      %19 = vector.load %arg6[%c0_18, %c0_19] : memref<4x256xf32, #tpu.memory_space<vmem>>, vector<4x256xf32>
      tpu.vector_store %arg6[%c0_18, %c0_19], %18 {strides = array<i32>} : memref<4x256xf32, #tpu.memory_space<vmem>>, vector<4x256xf32>,
    } else {
    }
    %c0 = arith.constant 0 : index
    %c0_1 = arith.constant 0 : index
    %c0_2 = arith.constant 0 : index
    %3 = vector.load %arg2[%c0, %c0_1, %c0_2] : memref<2x4x256xf32, #tpu.memory_space<vmem>>, vector<2x4x256xf32>
    %c0_3 = arith.constant 0 : index
    %c0_4 = arith.constant 0 : index
    %4 = vector.load %arg5[%c0_3, %c0_4] : memref<4x256xf32, #tpu.memory_space<vmem>>, vector<4x256xf32>
    %cst = arith.constant dense<0.000000e+00> : vector<4x256xf32>
    %5 = vector.multi_reduction <add>, %3, %cst [0] : vector<2x4x256xf32> to vector<4x256xf32>
    %6 = arith.addf %4, %5 : vector<4x256xf32>
    %c0_5 = arith.constant 0 : index
    %c0_6 = arith.constant 0 : index
    %7 = vector.load %arg5[%c0_5, %c0_6] : memref<4x256xf32, #tpu.memory_space<vmem>>, vector<4x256xf32>
    tpu.vector_store %arg5[%c0_5, %c0_6], %6 {strides = array<i32>} : memref<4x256xf32, #tpu.memory_space<vmem>>, vector<4x256xf32>,
    %c0_7 = arith.constant 0 : index
    %c0_8 = arith.constant 0 : index
    %8 = vector.load %arg6[%c0_7, %c0_8] : memref<4x256xf32, #tpu.memory_space<vmem>>, vector<4x256xf32>
    %9 = arith.mulf %3, %3 : vector<2x4x256xf32>
    %cst_9 = arith.constant dense<0.000000e+00> : vector<4x256xf32>
    %10 = vector.multi_reduction <add>, %9, %cst_9 [0] : vector<2x4x256xf32> to vector<4x256xf32>
    %11 = arith.addf %8, %10 : vector<4x256xf32>
    %c0_10 = arith.constant 0 : index
    %c0_11 = arith.constant 0 : index
    %12 = vector.load %arg6[%c0_10, %c0_11] : memref<4x256xf32, #tpu.memory_space<vmem>>, vector<4x256xf32>
    tpu.vector_store %arg6[%c0_10, %c0_11], %11 {strides = array<i32>} : memref<4x256xf32, #tpu.memory_space<vmem>>, vector<4x256xf32>,
    %c0_i32_12 = arith.constant 0 : i32
    %13 = arith.cmpi eq, %arg1, %c0_i32_12 : i32
    %14 = arith.extui %13 : i1 to i32
    %c0_i32_13 = arith.constant 0 : i32
    %15 = arith.cmpi ne, %14, %c0_i32_13 : i32
    scf.if %15 {
      %c0_14 = arith.constant 0 : index
      %c0_15 = arith.constant 0 : index
      %16 = vector.load %arg5[%c0_14, %c0_15] : memref<4x256xf32, #tpu.memory_space<vmem>>, vector<4x256xf32>
      %cst_16 = arith.constant dense<0.000000e+00> : vector<4xf32>
      %17 = vector.multi_reduction <add>, %16, %cst_16 [1] : vector<4x256xf32> to vector<4xf32>
      %18 = vector.shape_cast %17 : vector<4xf32> to vector<4x1xf32>
      %c0_17 = arith.constant 0 : index
      %c0_18 = arith.constant 0 : index
      %19 = vector.load %arg3[%c0_17, %c0_18] : memref<4x1xf32, #tpu.memory_space<vmem>>, vector<4x1xf32>
      tpu.vector_store %arg3[%c0_17, %c0_18], %18 {strides = array<i32>} : memref<4x1xf32, #tpu.memory_space<vmem>>, vector<4x1xf32>,
      %c0_19 = arith.constant 0 : index
      %c0_20 = arith.constant 0 : index
      %20 = vector.load %arg6[%c0_19, %c0_20] : memref<4x256xf32, #tpu.memory_space<vmem>>, vector<4x256xf32>
      %cst_21 = arith.constant dense<0.000000e+00> : vector<4xf32>
      %21 = vector.multi_reduction <add>, %20, %cst_21 [1] : vector<4x256xf32> to vector<4xf32>
      %22 = vector.shape_cast %21 : vector<4xf32> to vector<4x1xf32>
      %c0_22 = arith.constant 0 : index
      %c0_23 = arith.constant 0 : index
      %23 = vector.load %arg4[%c0_22, %c0_23] : memref<4x1xf32, #tpu.memory_space<vmem>>, vector<4x1xf32>
      tpu.vector_store %arg4[%c0_22, %c0_23], %22 {strides = array<i32>} : memref<4x1xf32, #tpu.memory_space<vmem>>, vector<4x1xf32>,
    } else {
    }
    return
  }
  func.func @transform_0(%arg0: i32, %arg1: i32) -> (i32, i32, i32) {
    %c0_i32 = arith.constant 0 : i32
    %c0_i32_0 = arith.constant 0 : i32
    return %c0_i32, %arg0, %arg1 : i32, i32, i32
  }
  func.func @transform_1(%arg0: i32, %arg1: i32) -> (i32, i32) {
    %c0_i32 = arith.constant 0 : i32
    %c0_i32_0 = arith.constant 0 : i32
    return %arg0, %c0_i32 : i32, i32
  }
  func.func @transform_2(%arg0: i32, %arg1: i32) -> (i32, i32) {
    %c0_i32 = arith.constant 0 : i32
    %c0_i32_0 = arith.constant 0 : i32
    return %arg0, %c0_i32 : i32, i32
  }
}

module attributes {stable_mosaic.version = 11 : i64} {
  func.func @_apply_kernel(%arg0: i32, %arg1: i32, %arg2: memref<2x4x256xf32, #tpu.memory_space<vmem>>, %arg3: memref<4x1xf32, #tpu.memory_space<vmem>>, %arg4: memref<4x1xf32, #tpu.memory_space<vmem>>, %arg5: memref<2x4x256xf32, #tpu.memory_space<vmem>>) attributes {dimension_semantics = [#tpu.dimension_semantics<parallel>, #tpu.dimension_semantics<parallel>], iteration_bounds = array<i64: 1, 1>, scalar_prefetch = 0 : i64, scratch_operands = 0 : i64, tpu.core_type = #tpu.core_type<tc>, window_params = [{transform_indices = @transform_0, window_bounds = array<i64: 2, 4, 256>}, {transform_indices = @transform_1, window_bounds = array<i64: 4, 1>}, {transform_indices = @transform_2, window_bounds = array<i64: 4, 1>}, {transform_indices = @transform_3, window_bounds = array<i64: 2, 4, 256>}]} {
    %c0 = arith.constant 0 : index
    %c0_0 = arith.constant 0 : index
    %c0_1 = arith.constant 0 : index
    %0 = vector.load %arg2[%c0, %c0_0, %c0_1] : memref<2x4x256xf32, #tpu.memory_space<vmem>>, vector<2x4x256xf32>
    %c0_2 = arith.constant 0 : index
    %c0_3 = arith.constant 0 : index
    %1 = vector.load %arg3[%c0_2, %c0_3] : memref<4x1xf32, #tpu.memory_space<vmem>>, vector<4x1xf32>
    %2 = vector.shape_cast %1 : vector<4x1xf32> to vector<1x4x1xf32>
    %c0_4 = arith.constant 0 : index
    %c0_5 = arith.constant 0 : index
    %3 = vector.load %arg4[%c0_4, %c0_5] : memref<4x1xf32, #tpu.memory_space<vmem>>, vector<4x1xf32>
    %4 = vector.shape_cast %3 : vector<4x1xf32> to vector<1x4x1xf32>
    %5 = vector.broadcast %2 : vector<1x4x1xf32> to vector<2x4x256xf32>
    %6 = arith.mulf %0, %5 : vector<2x4x256xf32>
    %7 = vector.broadcast %4 : vector<1x4x1xf32> to vector<2x4x256xf32>
    %8 = arith.addf %6, %7 : vector<2x4x256xf32>
    %c0_6 = arith.constant 0 : index
    %c0_7 = arith.constant 0 : index
    %c0_8 = arith.constant 0 : index
    %9 = vector.load %arg5[%c0_6, %c0_7, %c0_8] : memref<2x4x256xf32, #tpu.memory_space<vmem>>, vector<2x4x256xf32>
    tpu.vector_store %arg5[%c0_6, %c0_7, %c0_8], %8 {strides = array<i32>} : memref<2x4x256xf32, #tpu.memory_space<vmem>>, vector<2x4x256xf32>,
    return
  }
  func.func @transform_0(%arg0: i32, %arg1: i32) -> (i32, i32, i32) {
    %c0_i32 = arith.constant 0 : i32
    %c0_i32_0 = arith.constant 0 : i32
    return %c0_i32, %arg0, %arg1 : i32, i32, i32
  }
  func.func @transform_1(%arg0: i32, %arg1: i32) -> (i32, i32) {
    %c0_i32 = arith.constant 0 : i32
    %c0_i32_0 = arith.constant 0 : i32
    return %arg0, %c0_i32 : i32, i32
  }
  func.func @transform_2(%arg0: i32, %arg1: i32) -> (i32, i32) {
    %c0_i32 = arith.constant 0 : i32
    %c0_i32_0 = arith.constant 0 : i32
    return %arg0, %c0_i32 : i32, i32
  }
  func.func @transform_3(%arg0: i32, %arg1: i32) -> (i32, i32, i32) {
    %c0_i32 = arith.constant 0 : i32
    %c0_i32_0 = arith.constant 0 : i32
    return %c0_i32, %arg0, %arg1 : i32, i32, i32
  }
}

</mosaic_0001>

<bundles_post_ra>
// kernel: batchnorm2d.2
= control target key start
LH: loop header
LB: loop body
LE: loop exit
PB: predicated region body
PF: predicated region fallthrough
CT: control target
= control target key end

     0   :  { %vm25_vm0 = vcmask 1043456   ;;  %vm71_vm1 = vcmask 3072   ;;  %s134_s0 = inlined_call_operand.vmem [shape: f32[2,4,256], index: 0, kind: input, shape index: {}]   ;;  %s135_s1 = inlined_call_operand.vmem [shape: f32[4,1], index: 1, kind: output, shape index: {0}]   ;;  %s136_s2 = inlined_call_operand.vmem [shape: f32[4,1], index: 2, kind: output, shape index: {1}]  }
   0x1   :  { %v16_v0 = vld [vmem:[%s134_s0] sm:$0xff]  ;;  %v17_v1 = vld [vmem:[%s134_s0 + $0x8] sm:$0xff] }
   0x2   :  { %v21_v2 = vcombine.high %v16_v0, %v16_v0  ;;  %v22_v3 = vcombine.high %v17_v1, %v17_v1  ;;  %v26_v4 = vsel %vm25_vm0, %v16_v0, 0.0  ;;  %v27_v5 = vsel %vm25_vm0, %v17_v1, 0.0 }
   0x3   :  { %v28_v6 = vadd.f32 %v27_v5, %v26_v4  ;;  %v39_v7 = vmul.f32 %v16_v0, %v16_v0  ;;  %v40_v8 = vmul.f32 %v17_v1, %v17_v1 }
   0x4   :  { %v29_v9 = vsel %vm25_vm0, %v21_v2, 0.0  ;;  %v30_v10 = vsel %vm25_vm0, %v22_v3, 0.0 }
   0x5   :  { %v31_v11 = vadd.f32 %v30_v10, %v29_v9  ;;  %v43_v12 = vcombine.high %v39_v7, %v39_v7  ;;  %v44_v13 = vcombine.high %v40_v8, %v40_v8  ;;  %v47_v14 = vsel %vm25_vm0, %v39_v7, 0.0 }
   0x6   :  { %v48_v15 = vsel %vm25_vm0, %v40_v8, 0.0 }
   0x7   :  { %v34_v16 = vcombine.low %v28_v6, %v31_v11  ;;  %v91_v17 = vcombine.low %v31_v11, %v31_v11  ;;  %v49_v18 = vadd.f32 %v48_v15, %v47_v14  ;;  %v50_v19 = vsel %vm25_vm0, %v43_v12, 0.0 }
   0x8   :  { %v51_v20 = vsel %vm25_vm0, %v44_v13, 0.0 }
   0x9   :  { %v66_v21 = vsel %vm25_vm0, %v34_v16, 0.0  ;;  %v67_v22 = vsel %vm25_vm0, %v91_v17, 0.0  ;;  %v52_v23 = vadd.f32 %v51_v20, %v50_v19 }
   0xa   :  { %v68_v24 = vadd.f32 %v67_v22, %v66_v21 }
   0xb   :  { %v55_v25 = vcombine.low %v49_v18, %v52_v23  ;;  %v92_v26 = vcombine.low %v52_v23, %v52_v23 }
   0xc   :  { %69 = vadd.xlane.f32.xlu0 %v68_v24 }
   0xd   :  { %v77_v27 = vsel %vm25_vm0, %v55_v25, 0.0  ;;  %v78_v28 = vsel %vm25_vm0, %v92_v26, 0.0 }
   0xe   :  { %v79_v29 = vadd.f32 %v78_v28, %v77_v27 }
  0x10   :  { %80 = vadd.xlane.f32.xlu0 %v79_v29 }
  0x99   :  { %v70_v30 = vpop.xlane.xlu0 %69 }
  0x9a   :  { %72 = vst.msk [vmem:[%s135_s1] sm:$0xf] %vm71_vm1, %v70_v30 }
  0x9d   :  { %v81_v31 = vpop.xlane.xlu0 %80 }
  0x9e   :  { %82 = vst.msk [vmem:[%s136_s2] sm:$0xf] %vm71_vm1, %v81_v31 }

// kernel: batchnorm2d.3
= control target key start
LH: loop header
LB: loop body
LE: loop exit
PB: predicated region body
PF: predicated region fallthrough
CT: control target
= control target key end

     0   :  { %v55_v0 = vmov 0   ;;  %v56_v3 = vmov 839922192   ;;  %v25_v5 = vlaneseq  ;;  %s95_s1 = inlined_call_operand.vmem [shape: f32[4,1], index: 1, kind: input, shape index: {}]   ;;  %s96_s2 = inlined_call_operand.vmem [shape: f32[4,1], index: 2, kind: input, shape index: {}]   ;;  %s97_s0 = inlined_call_operand.vmem [shape: f32[2,4,256], index: 0, kind: input, shape index: {}]   ;;  %s98_s3 = inlined_call_operand.vmem [shape: f32[2,4,256], index: 3, kind: output, shape index: {}]  }
   0x1   :  { %54 = vset.pattern.permute.xlu0 %v55_v0  ;;  %v16_v1 = vld [vmem:[%s95_s1] sm:$0xf]  ;;  %v23_v4 = vunpack.c.l.s4 %v56_v3  ;;  %v15_v12 = vld [vmem:[%s97_s0 + $0x8] sm:$0xff] }
   0x2   :  { %20 = vperm.xlu0 %54, %v16_v1   ;;  %v17_v2 = vld [vmem:[%s96_s2] sm:$0xf]  ;;  %v26_v7 = vshrl.u32 %v25_v5, 7 }
   0x3   :  { %v24_v6 = vunpack.c.0.s8 %v23_v4  ;;  %v14_v11 = vld [vmem:[%s97_s0] sm:$0xff] }
   0x5   :  { %v27_v8 = vsub.s32 %v24_v6, %v26_v7 }
   0x6   :  { %34 = vperm.xlu0 %54, %v17_v2  }
  0x81   :  { %v21_v9 = vpop.permute.xlu0 %20 }
  0x82   :  { %v28_v10 = vrot.slane %v21_v9, %v27_v8 }
  0x84   :  { %v30_v14 = vmul.f32 %v28_v10, %v14_v11  ;;  %v31_v15 = vmul.f32 %v28_v10, %v15_v12 }
  0x85   :  { %v35_v13 = vpop.permute.xlu0 %34 }
  0x86   :  { %v42_v16 = vrot.slane %v35_v13, %v27_v8 }
  0x88   :  { %v44_v17 = vadd.f32 %v42_v16, %v30_v14  ;;  %v45_v18 = vadd.f32 %v42_v16, %v31_v15 }
  0x8a   :  { %46 = vst [vmem:[%s98_s3] sm:$0xff] %v44_v17  ;;  %47 = vst [vmem:[%s98_s3 + $0x8] sm:$0xff] %v45_v18 }

</bundles_post_ra>
